<compile_context>
chip_gen: v5e
topology: v5e:2x2
jax: 0.10.0
libtpu: 0.0.40
codegen_flags: <defaults>
</compile_context>

<pallas_src>
import jax
import jax.numpy as jnp
from jax.experimental import pallas as pl
from jax.experimental.pallas import tpu as pltpu

DIMS = (384, 256, 128, 64, 10)   # fc1..fc4, matching the PyTorch module
D_OUT_PAD = 128                  # lane-dense output slab width


def deepnet_kernel(x_ref,
                   w1_ref, b1_ref,
                   w2_ref, b2_ref,
                   w3_ref, b3_ref,
                   w4_ref, b4_ref,
                   out_ref):
    # Fully fused MLP on one (TB, 384) batch tile: 4 MXU matmuls (bf16 in, f32 acc)
    # + bias adds and ReLUs on the VPU. x arrives as f32 and is cast here (in-kernel)
    # so the wrapper never materializes a bf16 copy of x in HBM.
    h = x_ref[...].astype(jnp.bfloat16)
    h = jnp.dot(h, w1_ref[...], preferred_element_type=jnp.float32) + b1_ref[...]
    h = jnp.maximum(h, 0.0).astype(jnp.bfloat16)
    h = jnp.dot(h, w2_ref[...], preferred_element_type=jnp.float32) + b2_ref[...]
    h = jnp.maximum(h, 0.0).astype(jnp.bfloat16)
    h = jnp.dot(h, w3_ref[...], preferred_element_type=jnp.float32) + b3_ref[...]
    h = jnp.maximum(h, 0.0).astype(jnp.bfloat16)
    y = jnp.dot(h, w4_ref[...], preferred_element_type=jnp.float32) + b4_ref[...]
    out_ref[...] = y.astype(out_ref.dtype)   # bf16 lane-dense store


def prepare_params(params):
    """One-time preparation of kernel operands (hoisted out of the per-call path):
    bf16 weights, f32 biases, head zero-padded to a 128-wide lane-dense slab."""
    d_out = DIMS[-1]
    prepped = {}
    for i in range(1, 5):
        prepped[f"w{i}"] = params[f"w{i}"].astype(jnp.bfloat16)
        prepped[f"b{i}"] = params[f"b{i}"].astype(jnp.float32)
    prepped["w4"] = jnp.pad(prepped["w4"], ((0, 0), (0, D_OUT_PAD - d_out)))
    prepped["b4"] = jnp.pad(prepped["b4"], ((0, 0), (0, D_OUT_PAD - d_out)))
    return jax.tree.map(jax.block_until_ready, prepped)


def _choose_tile(B, tb):
    """Batch tile selection: clamp for tiny batches; for large batches keep TB a
    multiple of 128 and prefer an even tile count so v7x's 2 TCs both get work."""
    if B <= tb:
        return max(8, ((B + 7) // 8) * 8)          # single tile, sublane-aligned
    n_tiles = pl.cdiv(B, tb)
    if n_tiles % 2 == 1:                           # v7x: avoid an odd tile count
        n_tiles += 1
    TB = ((pl.cdiv(B, n_tiles) + 127) // 128) * 128
    return max(128, TB)


def deepnet_forward(x, prepped, *, tb=512):
    """x: (B, 384) f32. prepped: output of prepare_params()."""
    B = x.shape[0]
    d_in, d_out = DIMS[0], DIMS[-1]

    TB = _choose_tile(B, tb)
    n_tiles = pl.cdiv(B, TB)
    B_pad = n_tiles * TB

    # Pad x (f32, no cast) only when the batch is not tile-divisible.
    x_in = x if B_pad == B else jnp.pad(x, ((0, B_pad - B), (0, 0)))

    w = [prepped[f"w{i}"] for i in range(1, 5)]
    b = [prepped[f"b{i}"] for i in range(1, 5)]
    operands = (x_in, w[0], b[0], w[1], b[1], w[2], b[2], w[3], b[3])

    # x / out tiled over batch; weights & biases use a constant block index so the
    # pipeliner copies them into VMEM once and keeps them resident for every tile.
    in_specs = [pl.BlockSpec((TB, d_in), lambda i: (i, 0))]
    for op in operands[1:]:
        in_specs.append(pl.BlockSpec(op.shape, lambda i: (0, 0)))   # full-array block
    out_spec = pl.BlockSpec((TB, D_OUT_PAD), lambda i: (i, 0))

    flops = 2 * B_pad * (DIMS[0] * DIMS[1] + DIMS[1] * DIMS[2]
                         + DIMS[2] * DIMS[3] + DIMS[3] * D_OUT_PAD)
    bytes_accessed = (x_in.size * 4                      # f32 x read
                      + sum(wi.size * 2 for wi in w)     # bf16 weights
                      + sum(bi.size * 4 for bi in b)     # f32 biases
                      + B_pad * D_OUT_PAD * 2)           # bf16 output slab

    y_pad = pl.pallas_call(
        deepnet_kernel,
        out_shape=jax.ShapeDtypeStruct((B_pad, D_OUT_PAD), jnp.bfloat16),
        grid=(n_tiles,),
        in_specs=in_specs,
        out_specs=out_spec,
        compiler_params=pltpu.CompilerParams(
            dimension_semantics=("parallel",),        # v7x: batch tiles over 2 TCs
            vmem_limit_bytes=32 * 1024 * 1024),       # fits v5e/v6e/v7x with margin
        cost_estimate=pl.CostEstimate(
            flops=flops, transcendentals=0, bytes_accessed=bytes_accessed),
    )(*operands)

    # Slice off batch/head padding; give the caller f32 like the PyTorch module.
    return y_pad[:B, :d_out].astype(jnp.float32)


def init_params(key):
    """Deterministic init matching nn.Linear shapes (weights stored as (in, out))."""
    params = {}
    keys = jax.random.split(key, 2 * (len(DIMS) - 1))
    for i in range(len(DIMS) - 1):
        fan_in, fan_out = DIMS[i], DIMS[i + 1]
        bound = 1.0 / jnp.sqrt(fan_in)
        params[f"w{i + 1}"] = jax.random.uniform(
            keys[2 * i], (fan_in, fan_out), minval=-bound, maxval=bound,
            dtype=jnp.float32)
        params[f"b{i + 1}"] = jax.random.uniform(
            keys[2 * i + 1], (1, fan_out), minval=-bound, maxval=bound,
            dtype=jnp.float32)
    return params


def reference_forward_f32(x, params):
    h = jnp.maximum(x @ params["w1"] + params["b1"], 0.0)
    h = jnp.maximum(h @ params["w2"] + params["b2"], 0.0)
    h = jnp.maximum(h @ params["w3"] + params["b3"], 0.0)
    return h @ params["w4"] + params["b4"]


def reference_forward_bf16(x, params):
    # Emulates the kernel numerics: bf16 matmul inputs, f32 accumulation, f32 bias,
    # bf16 output store.
    bf = lambda a: a.astype(jnp.bfloat16).astype(jnp.float32)
    h = bf(x)
    h = jnp.maximum(h @ bf(params["w1"]) + params["b1"], 0.0)
    h = bf(h)
    h = jnp.maximum(h @ bf(params["w2"]) + params["b2"], 0.0)
    h = bf(h)
    h = jnp.maximum(h @ bf(params["w3"]) + params["b3"], 0.0)
    h = bf(h)
    y = h @ bf(params["w4"]) + params["b4"]
    return bf(y)


if __name__ == "__main__":
    key = jax.random.PRNGKey(0)
    k_x, k_p = jax.random.split(key)

    B = 8  # small batch for the smoke test
    x = jax.random.normal(k_x, (B, DIMS[0]), dtype=jnp.float32)
    params = init_params(k_p)
    prepped = prepare_params(params)   # one-time prep, not in the per-call path

    y = deepnet_forward(x, prepped)
    y = jax.block_until_ready(y)
    assert y.shape == (B, DIMS[-1])
    assert y.dtype == jnp.float32

    y_ref_bf16 = reference_forward_bf16(x, params)   # matches kernel numerics
    y_ref_f32 = reference_forward_f32(x, params)     # PyTorch-spec f32 semantics
    assert jnp.allclose(y, y_ref_bf16, atol=1e-2, rtol=1e-2)
    assert jnp.allclose(y, y_ref_f32, atol=5e-2, rtol=5e-2)

    print("KERNEL_OK")
</pallas_src>

<mosaic_0001>
module attributes {stable_mosaic.version = 11 : i64} {
  func.func @deepnet_kernel(%arg0: i32, %arg1: memref<8x384xf32, #tpu.memory_space<vmem>>, %arg2: memref<384x256xbf16, #tpu.memory_space<vmem>>, %arg3: memref<1x256xf32, #tpu.memory_space<vmem>>, %arg4: memref<256x128xbf16, #tpu.memory_space<vmem>>, %arg5: memref<1x128xf32, #tpu.memory_space<vmem>>, %arg6: memref<128x64xbf16, #tpu.memory_space<vmem>>, %arg7: memref<1x64xf32, #tpu.memory_space<vmem>>, %arg8: memref<64x128xbf16, #tpu.memory_space<vmem>>, %arg9: memref<1x128xf32, #tpu.memory_space<vmem>>, %arg10: memref<8x128xbf16, #tpu.memory_space<vmem>>) attributes {dimension_semantics = [#tpu.dimension_semantics<parallel>], iteration_bounds = array<i64: 1>, scalar_prefetch = 0 : i64, scratch_operands = 0 : i64, tpu.core_type = #tpu.core_type<tc>, window_params = [{transform_indices = @transform_0, window_bounds = array<i64: 8, 384>}, {pipeline_mode = #tpu.pipeline_mode<synchronous>, transform_indices = @transform_1, window_bounds = array<i64: 384, 256>}, {pipeline_mode = #tpu.pipeline_mode<synchronous>, transform_indices = @transform_2, window_bounds = array<i64: 1, 256>}, {pipeline_mode = #tpu.pipeline_mode<synchronous>, transform_indices = @transform_3, window_bounds = array<i64: 256, 128>}, {pipeline_mode = #tpu.pipeline_mode<synchronous>, transform_indices = @transform_4, window_bounds = array<i64: 1, 128>}, {pipeline_mode = #tpu.pipeline_mode<synchronous>, transform_indices = @transform_5, window_bounds = array<i64: 128, 64>}, {pipeline_mode = #tpu.pipeline_mode<synchronous>, transform_indices = @transform_6, window_bounds = array<i64: 1, 64>}, {pipeline_mode = #tpu.pipeline_mode<synchronous>, transform_indices = @transform_7, window_bounds = array<i64: 64, 128>}, {pipeline_mode = #tpu.pipeline_mode<synchronous>, transform_indices = @transform_8, window_bounds = array<i64: 1, 128>}, {transform_indices = @transform_9, window_bounds = array<i64: 8, 128>}]} {
    %c0 = arith.constant 0 : index
    %c0_0 = arith.constant 0 : index
    %0 = vector.load %arg1[%c0, %c0_0] : memref<8x384xf32, #tpu.memory_space<vmem>>, vector<8x384xf32>
    %1 = arith.truncf %0 : vector<8x384xf32> to vector<8x384xbf16>
    %c0_1 = arith.constant 0 : index
    %c0_2 = arith.constant 0 : index
    %2 = vector.load %arg2[%c0_1, %c0_2] : memref<384x256xbf16, #tpu.memory_space<vmem>>, vector<384x256xbf16>
    %cst = arith.constant dense<0.000000e+00> : vector<8x256xf32>
    %3 = tpu.matmul %1, %2, %cst {dimension_numbers = #tpu.dot_dimension_numbers<[1], [0], [0], [1], [0, 0, 1, 1], [], []>} : vector<8x384xbf16>, vector<384x256xbf16>, vector<8x256xf32> -> vector<8x256xf32>
    %c0_3 = arith.constant 0 : index
    %c0_4 = arith.constant 0 : index
    %4 = vector.load %arg3[%c0_3, %c0_4] : memref<1x256xf32, #tpu.memory_space<vmem>>, vector<1x256xf32>
    %5 = vector.broadcast %4 : vector<1x256xf32> to vector<8x256xf32>
    %6 = arith.addf %3, %5 : vector<8x256xf32>
    %cst_5 = arith.constant 0.000000e+00 : f32
    %7 = vector.broadcast %cst_5 : f32 to vector<8x256xf32>
    %8 = arith.maximumf %6, %7 : vector<8x256xf32>
    %9 = arith.truncf %8 : vector<8x256xf32> to vector<8x256xbf16>
    %c0_6 = arith.constant 0 : index
    %c0_7 = arith.constant 0 : index
    %10 = vector.load %arg4[%c0_6, %c0_7] : memref<256x128xbf16, #tpu.memory_space<vmem>>, vector<256x128xbf16>
    %cst_8 = arith.constant dense<0.000000e+00> : vector<8x128xf32>
    %11 = tpu.matmul %9, %10, %cst_8 {dimension_numbers = #tpu.dot_dimension_numbers<[1], [0], [0], [1], [0, 0, 1, 1], [], []>} : vector<8x256xbf16>, vector<256x128xbf16>, vector<8x128xf32> -> vector<8x128xf32>
    %c0_9 = arith.constant 0 : index
    %c0_10 = arith.constant 0 : index
    %12 = vector.load %arg5[%c0_9, %c0_10] : memref<1x128xf32, #tpu.memory_space<vmem>>, vector<1x128xf32>
    %13 = vector.broadcast %12 : vector<1x128xf32> to vector<8x128xf32>
    %14 = arith.addf %11, %13 : vector<8x128xf32>
    %cst_11 = arith.constant 0.000000e+00 : f32
    %15 = vector.broadcast %cst_11 : f32 to vector<8x128xf32>
    %16 = arith.maximumf %14, %15 : vector<8x128xf32>
    %17 = arith.truncf %16 : vector<8x128xf32> to vector<8x128xbf16>
    %c0_12 = arith.constant 0 : index
    %c0_13 = arith.constant 0 : index
    %18 = vector.load %arg6[%c0_12, %c0_13] : memref<128x64xbf16, #tpu.memory_space<vmem>>, vector<128x64xbf16>
    %cst_14 = arith.constant dense<0.000000e+00> : vector<8x64xf32>
    %19 = tpu.matmul %17, %18, %cst_14 {dimension_numbers = #tpu.dot_dimension_numbers<[1], [0], [0], [1], [0, 0, 1, 1], [], []>} : vector<8x128xbf16>, vector<128x64xbf16>, vector<8x64xf32> -> vector<8x64xf32>
    %c0_15 = arith.constant 0 : index
    %c0_16 = arith.constant 0 : index
    %20 = vector.load %arg7[%c0_15, %c0_16] : memref<1x64xf32, #tpu.memory_space<vmem>>, vector<1x64xf32>
    %21 = vector.broadcast %20 : vector<1x64xf32> to vector<8x64xf32>
    %22 = arith.addf %19, %21 : vector<8x64xf32>
    %cst_17 = arith.constant 0.000000e+00 : f32
    %23 = vector.broadcast %cst_17 : f32 to vector<8x64xf32>
    %24 = arith.maximumf %22, %23 : vector<8x64xf32>
    %25 = arith.truncf %24 : vector<8x64xf32> to vector<8x64xbf16>
    %c0_18 = arith.constant 0 : index
    %c0_19 = arith.constant 0 : index
    %26 = vector.load %arg8[%c0_18, %c0_19] : memref<64x128xbf16, #tpu.memory_space<vmem>>, vector<64x128xbf16>
    %cst_20 = arith.constant dense<0.000000e+00> : vector<8x128xf32>
    %27 = tpu.matmul %25, %26, %cst_20 {dimension_numbers = #tpu.dot_dimension_numbers<[1], [0], [0], [1], [0, 0, 1, 1], [], []>} : vector<8x64xbf16>, vector<64x128xbf16>, vector<8x128xf32> -> vector<8x128xf32>
    %c0_21 = arith.constant 0 : index
    %c0_22 = arith.constant 0 : index
    %28 = vector.load %arg9[%c0_21, %c0_22] : memref<1x128xf32, #tpu.memory_space<vmem>>, vector<1x128xf32>
    %29 = vector.broadcast %28 : vector<1x128xf32> to vector<8x128xf32>
    %30 = arith.addf %27, %29 : vector<8x128xf32>
    %31 = arith.truncf %30 : vector<8x128xf32> to vector<8x128xbf16>
    %c0_23 = arith.constant 0 : index
    %c0_24 = arith.constant 0 : index
    %32 = vector.load %arg10[%c0_23, %c0_24] : memref<8x128xbf16, #tpu.memory_space<vmem>>, vector<8x128xbf16>
    tpu.vector_store %arg10[%c0_23, %c0_24], %31 {strides = array<i32>} : memref<8x128xbf16, #tpu.memory_space<vmem>>, vector<8x128xbf16>,
    return
  }
  func.func @transform_0(%arg0: i32) -> (i32, i32) {
    %c0_i32 = arith.constant 0 : i32
    %c0_i32_0 = arith.constant 0 : i32
    return %arg0, %c0_i32 : i32, i32
  }
  func.func @transform_1(%arg0: i32) -> (i32, i32) {
    %c0_i32 = arith.constant 0 : i32
    %c0_i32_0 = arith.constant 0 : i32
    %c0_i32_1 = arith.constant 0 : i32
    return %c0_i32, %c0_i32_0 : i32, i32
  }
  func.func @transform_2(%arg0: i32) -> (i32, i32) {
    %c0_i32 = arith.constant 0 : i32
    %c0_i32_0 = arith.constant 0 : i32
    %c0_i32_1 = arith.constant 0 : i32
    return %c0_i32, %c0_i32_0 : i32, i32
  }
  func.func @transform_3(%arg0: i32) -> (i32, i32) {
    %c0_i32 = arith.constant 0 : i32
    %c0_i32_0 = arith.constant 0 : i32
    %c0_i32_1 = arith.constant 0 : i32
    return %c0_i32, %c0_i32_0 : i32, i32
  }
  func.func @transform_4(%arg0: i32) -> (i32, i32) {
    %c0_i32 = arith.constant 0 : i32
    %c0_i32_0 = arith.constant 0 : i32
    %c0_i32_1 = arith.constant 0 : i32
    return %c0_i32, %c0_i32_0 : i32, i32
  }
  func.func @transform_5(%arg0: i32) -> (i32, i32) {
    %c0_i32 = arith.constant 0 : i32
    %c0_i32_0 = arith.constant 0 : i32
    %c0_i32_1 = arith.constant 0 : i32
    return %c0_i32, %c0_i32_0 : i32, i32
  }
  func.func @transform_6(%arg0: i32) -> (i32, i32) {
    %c0_i32 = arith.constant 0 : i32
    %c0_i32_0 = arith.constant 0 : i32
    %c0_i32_1 = arith.constant 0 : i32
    return %c0_i32, %c0_i32_0 : i32, i32
  }
  func.func @transform_7(%arg0: i32) -> (i32, i32) {
    %c0_i32 = arith.constant 0 : i32
    %c0_i32_0 = arith.constant 0 : i32
    %c0_i32_1 = arith.constant 0 : i32
    return %c0_i32, %c0_i32_0 : i32, i32
  }
  func.func @transform_8(%arg0: i32) -> (i32, i32) {
    %c0_i32 = arith.constant 0 : i32
    %c0_i32_0 = arith.constant 0 : i32
    %c0_i32_1 = arith.constant 0 : i32
    return %c0_i32, %c0_i32_0 : i32, i32
  }
  func.func @transform_9(%arg0: i32) -> (i32, i32) {
    %c0_i32 = arith.constant 0 : i32
    %c0_i32_0 = arith.constant 0 : i32
    return %arg0, %c0_i32 : i32, i32
  }
}

</mosaic_0001>

<bundles_post_ra>
// kernel: tpu_custom_call.1
= control target key start
LH: loop header
LB: loop body
LE: loop exit
PB: predicated region body
PF: predicated region fallthrough
CT: control target
= control target key end

     0   :  { %14 = vsyncpa [#allocation3], 0  ;;  %s1364_s0 = inlined_call_operand.vmem [shape: f32[8,384], index: 0, kind: input, shape index: {}]   ;;  %s1365_s1 = inlined_call_operand.hbm [shape: bf16[384,256], index: 1, kind: input, shape index: {}]   ;;  %s1366_s2 = inlined_call_operand.vmem [shape: f32[1,256], index: 2, kind: input, shape index: {}]   ;;  %s1367_s3 = inlined_call_operand.hbm [shape: bf16[256,128], index: 3, kind: input, shape index: {}]   ;;  %s1368_s4 = inlined_call_operand.vmem [shape: f32[1,128], index: 4, kind: input, shape index: {}]   ;;  %s1369_s5 = inlined_call_operand.vmem [shape: bf16[128,64], index: 5, kind: input, shape index: {}]   ;;  %s1370_s6 = inlined_call_operand.vmem [shape: f32[1,64], index: 6, kind: input, shape index: {}]   ;;  %s1371_s7 = inlined_call_operand.vmem [shape: bf16[64,128], index: 7, kind: input, shape index: {}]   ;;  %s1372_s8 = inlined_call_operand.vmem [shape: f32[1,128], index: 8, kind: input, shape index: {}]   ;;  %s1373_s9 = inlined_call_operand.hbm [shape: bf16[8,128], index: 9, kind: output, shape index: {}]  }
   0x1   :  { %15 = vsyncpa [#allocation6], 0 }
   0x2   :  { %16 = vsyncpa [#allocation4], 0  ;;  %s23_s11 = sshll.u32 %s1365_s1, 4  ;;  %s1233_s12 = smov [#allocation2]   ;;  %s24_s11 = int_to_ptr.hbm [resolvable:$true] %s23_s11 }
   0x3   :  { %s25_s13 = sshll.u32 %s1233_s12, 4  ;;  %s38_s16 = sshll.u32 %s1367_s3, 4  ;;  %s26_s13 = int_to_ptr.vmem [resolvable:$true] %s25_s13  ;;  %s39_s16 = int_to_ptr.hbm [resolvable:$true] %s38_s16 }
   0x4   :  { %s1234_s17 = smov 128   ;;  %s1235_s18 = smov 8  }
   0x5   :  { %31 = dma.hbm_to_vmem [thread:$0]  %s24_s11, 6144, %s26_s13, [#allocation3], %s1234_s17, %s1234_s17, %s1235_s18  }
   0x6   :  { %s1236_s19 = smov [#allocation5]   ;;  %s1237_s21 = smov 64  }
   0x7   :  { %s40_s20 = sshll.u32 %s1236_s19, 4  ;;  %s1238_s22 = smov 4   ;;  %s41_s20 = int_to_ptr.vmem [resolvable:$true] %s40_s20 }
   0x8   :  { %46 = dma.hbm_to_vmem [thread:$0]  %s39_s16, 2048, %s41_s20, [#allocation6], %s1237_s21, %s1237_s21, %s1238_s22  }
   0x9   :  { %1227 = dma.done.wait [#allocation3], 6144  }
   0xa   :  { %1228 = vsyncadd [#allocation3], 4294961152 }
   0xb   :  { %1229 = dma.done.wait [#allocation6], 2048  }
   0xc   :  { %1230 = vsyncadd [#allocation6], 4294965248  ;;  %v822_v0 = vld [vmem:[#allocation2 + $0x70] sm:$0xf]  ;;  %v1084_v1 = vld [vmem:[#allocation2 + $0x74] sm:$0xf0] }
   0xd   :  { %v886_v2 = vld [vmem:[#allocation2 + $0xf0] sm:$0xf]  ;;  %v823_v3 = vor.u32 %v1084_v1, %v822_v0  ;;  %v1100_v4 = vld [vmem:[#allocation2 + $0xf4] sm:$0xf0]  ;;  %v814_v9 = vld [vmem:[#allocation2 + $0x60] sm:$0xf] }
   0xe   :  { %v950_v5 = vld [vmem:[#allocation2 + $0x170] sm:$0xf]  ;;  %v1116_v6 = vld [vmem:[#allocation2 + $0x174] sm:$0xf0]  ;;  %v887_v7 = vor.u32 %v1100_v4, %v886_v2  ;;  %v1082_v10 = vld [vmem:[#allocation2 + $0x64] sm:$0xf0] }
   0xf   :  { %v951_v8 = vor.u32 %v1116_v6, %v950_v5  ;;  %v878_v11 = vld [vmem:[#allocation2 + $0xe0] sm:$0xf]  ;;  %366 = vmatpush.bf16.msra.mxu0 %v823_v3  ;;  %v815_v12 = vor.u32 %v1082_v10, %v814_v9  ;;  %v1098_v13 = vld [vmem:[#allocation2 + $0xe4] sm:$0xf0]  ;;  %v806_v18 = vld [vmem:[#allocation2 + $0x50] sm:$0xf] }
  0x10   :  { %v942_v14 = vld [vmem:[#allocation2 + $0x160] sm:$0xf]  ;;  %v1114_v15 = vld [vmem:[#allocation2 + $0x164] sm:$0xf0]  ;;  %379 = vmatpush.bf16.msra.mxu1 %v887_v7  ;;  %v879_v16 = vor.u32 %v1098_v13, %v878_v11  ;;  %v1080_v19 = vld [vmem:[#allocation2 + $0x54] sm:$0xf0] }
  0x11   :  { %392 = vmatpush.bf16.msra.mxu2 %v951_v8  ;;  %v943_v17 = vor.u32 %v1114_v15, %v942_v14  ;;  %v870_v20 = vld [vmem:[#allocation2 + $0xd0] sm:$0xf]  ;;  %v1096_v21 = vld [vmem:[#allocation2 + $0xd4] sm:$0xf0]  ;;  %v807_v24 = vor.u32 %v1080_v19, %v806_v18  ;;  %v1083_v25 = vld [vmem:[#allocation2 + $0x74] sm:$0xf] }
  0x12   :  { %v934_v22 = vld [vmem:[#allocation2 + $0x150] sm:$0xf]  ;;  %v1112_v23 = vld [vmem:[#allocation2 + $0x154] sm:$0xf0]  ;;  %v824_v26 = vld [vmem:[#allocation2 + $0x78] sm:$0xf0]  ;;  %v871_v27 = vor.u32 %v1096_v21, %v870_v20 }
  0x13   :  { %367 = vmatpush.bf16.msra.mxu0 %v815_v12  ;;  %v935_v28 = vor.u32 %v1112_v23, %v934_v22  ;;  %v798_v29 = vld [vmem:[#allocation2 + $0x40] sm:$0xf]  ;;  %v1078_v30 = vld [vmem:[#allocation2 + $0x44] sm:$0xf0]  ;;  %v827_v32 = vor.u32 %v1083_v25, %v824_v26  ;;  %v1081_v36 = vld [vmem:[#allocation2 + $0x64] sm:$0xf] }
  0x14   :  { %380 = vmatpush.bf16.msra.mxu1 %v879_v16  ;;  %v862_v31 = vld [vmem:[#allocation2 + $0xc0] sm:$0xf]  ;;  %v1094_v33 = vld [vmem:[#allocation2 + $0xc4] sm:$0xf0]  ;;  %v816_v37 = vld [vmem:[#allocation2 + $0x68] sm:$0xf0]  ;;  %v799_v38 = vor.u32 %v1078_v30, %v798_v29 }
  0x15   :  { %393 = vmatpush.bf16.msra.mxu2 %v943_v17  ;;  %v926_v34 = vld [vmem:[#allocation2 + $0x140] sm:$0xf]  ;;  %v1110_v35 = vld [vmem:[#allocation2 + $0x144] sm:$0xf0]  ;;  %405 = vmatpush.bf16.msra.mxu3 %v827_v32  ;;  %v790_v39 = vld [vmem:[#allocation2 + $0x30] sm:$0xf]  ;;  %v819_v41 = vor.u32 %v1081_v36, %v816_v37  ;;  %v863_v42 = vor.u32 %v1094_v33, %v862_v31 }
  0x16   :  { %v1076_v40 = vld [vmem:[#allocation2 + $0x34] sm:$0xf0]  ;;  %v927_v43 = vor.u32 %v1110_v35, %v926_v34  ;;  %v854_v44 = vld [vmem:[#allocation2 + $0xb0] sm:$0xf]  ;;  %v1079_v46 = vld [vmem:[#allocation2 + $0x54] sm:$0xf] }
  0x17   :  { %368 = vmatpush.bf16.msra.mxu0 %v807_v24  ;;  %v1092_v45 = vld [vmem:[#allocation2 + $0xb4] sm:$0xf0]  ;;  %v918_v47 = vld [vmem:[#allocation2 + $0x130] sm:$0xf]  ;;  %v808_v49 = vld [vmem:[#allocation2 + $0x58] sm:$0xf0]  ;;  %v791_v51 = vor.u32 %v1076_v40, %v790_v39 }
  0x18   :  { %381 = vmatpush.bf16.msra.mxu1 %v871_v27  ;;  %v1108_v48 = vld [vmem:[#allocation2 + $0x134] sm:$0xf0]  ;;  %v811_v50 = vor.u32 %v1079_v46, %v808_v49  ;;  %v1077_v52 = vld [vmem:[#allocation2 + $0x44] sm:$0xf]  ;;  %v800_v53 = vld [vmem:[#allocation2 + $0x48] sm:$0xf0]  ;;  %v855_v54 = vor.u32 %v1092_v45, %v854_v44 }
  0x19   :  { %394 = vmatpush.bf16.msra.mxu2 %v935_v28  ;;  %406 = vmatpush.bf16.msra.mxu3 %v819_v41  ;;  %v919_v55 = vor.u32 %v1108_v48, %v918_v47  ;;  %v782_v56 = vld [vmem:[#allocation2 + $0x20] sm:$0xf]  ;;  %v1074_v57 = vld [vmem:[#allocation2 + $0x24] sm:$0xf0]  ;;  %v803_v62 = vor.u32 %v1077_v52, %v800_v53  ;;  %v1075_v0 = vld [vmem:[#allocation2 + $0x34] sm:$0xf] }
  0x1a   :  { %v846_v58 = vld [vmem:[#allocation2 + $0xa0] sm:$0xf]  ;;  %v1090_v59 = vld [vmem:[#allocation2 + $0xa4] sm:$0xf0]  ;;  %v783_v63 = vor.u32 %v1074_v57, %v782_v56  ;;  %v792_v1 = vld [vmem:[#allocation2 + $0x38] sm:$0xf0] }
  0x1b   :  { %369 = vmatpush.bf16.msra.mxu0 %v799_v38  ;;  %v910_v60 = vld [vmem:[#allocation2 + $0x120] sm:$0xf]  ;;  %v1106_v61 = vld [vmem:[#allocation2 + $0x124] sm:$0xf0]  ;;  %v847_v2 = vor.u32 %v1090_v59, %v846_v58  ;;  %v774_v4 = vld [vmem:[#allocation2 + $0x10] sm:$0xf]  ;;  %v795_v10 = vor.u32 %v1075_v0, %v792_v1 }
  0x1c   :  { %382 = vmatpush.bf16.msra.mxu1 %v863_v42  ;;  %v911_v3 = vor.u32 %v1106_v61, %v910_v60  ;;  %v1072_v5 = vld [vmem:[#allocation2 + $0x14] sm:$0xf0]  ;;  %v838_v6 = vld [vmem:[#allocation2 + $0x90] sm:$0xf]  ;;  %v766_v12 = vld [vmem:[#allocation2] sm:$0xf] }
  0x1d   :  { %395 = vmatpush.bf16.msra.mxu2 %v927_v43  ;;  %407 = vmatpush.bf16.msra.mxu3 %v811_v50  ;;  %v1088_v7 = vld [vmem:[#allocation2 + $0x94] sm:$0xf0]  ;;  %v902_v8 = vld [vmem:[#allocation2 + $0x110] sm:$0xf]  ;;  %v775_v11 = vor.u32 %v1072_v5, %v774_v4  ;;  %v1073_v13 = vld [vmem:[#allocation2 + $0x24] sm:$0xf] }
  0x1e   :  { %v1104_v9 = vld [vmem:[#allocation2 + $0x114] sm:$0xf0]  ;;  %v784_v14 = vld [vmem:[#allocation2 + $0x28] sm:$0xf0]  ;;  %v839_v15 = vor.u32 %v1088_v7, %v838_v6  ;;  %v1070_v17 = vld [vmem:[#allocation2 + $0x4] sm:$0xf0] }
  0x1f   :  { %370 = vmatpush.bf16.msra.mxu0 %v791_v51  ;;  %v903_v16 = vor.u32 %v1104_v9, %v902_v8  ;;  %v830_v18 = vld [vmem:[#allocation2 + $0x80] sm:$0xf]  ;;  %v1086_v19 = vld [vmem:[#allocation2 + $0x84] sm:$0xf0]  ;;  %v1099_v20 = vld [vmem:[#allocation2 + $0xf4] sm:$0xf]  ;;  %v787_v26 = vor.u32 %v1073_v13, %v784_v14  ;;  %v767_v27 = vor.u32 %v1070_v17, %v766_v12 }
  0x20   :  { %383 = vmatpush.bf16.msra.mxu1 %v855_v54  ;;  %v888_v21 = vld [vmem:[#allocation2 + $0xf8] sm:$0xf0]  ;;  %v1115_v22 = vld [vmem:[#allocation2 + $0x174] sm:$0xf]  ;;  %v894_v24 = vld [vmem:[#allocation2 + $0x100] sm:$0xf]  ;;  %v831_v31 = vor.u32 %v1086_v19, %v830_v18 }
  0x21   :  { %396 = vmatpush.bf16.msra.mxu2 %v919_v55  ;;  %408 = vmatpush.bf16.msra.mxu3 %v803_v62  ;;  %v952_v23 = vld [vmem:[#allocation2 + $0x178] sm:$0xf0]  ;;  %v1102_v25 = vld [vmem:[#allocation2 + $0x104] sm:$0xf0]  ;;  %v66_v28 = vld [vmem:[%s1364_s0] sm:$0xff]  ;;  %v891_v32 = vor.u32 %v1099_v20, %v888_v21  ;;  %vm727_vm0 = vcmask 523264  }
  0x22   :  { %v1071_v29 = vld [vmem:[#allocation2 + $0x14] sm:$0xf]  ;;  %v776_v30 = vld [vmem:[#allocation2 + $0x18] sm:$0xf0]  ;;  %v67_v33 = vld [vmem:[%s1364_s0 + $0x8] sm:$0xff]  ;;  %v955_v34 = vor.u32 %v1115_v22, %v952_v23  ;;  %v895_v35 = vor.u32 %v1102_v25, %v894_v24  ;;  %v69_v41 = vpack.c.bf16 %v66_v28, %v66_v28  ;;  %s1239_s30 = smov [#allocation7]  }
  0x23   :  { %371 = vmatpush.bf16.msra.mxu0 %v783_v63  ;;  %v1097_v36 = vld [vmem:[#allocation2 + $0xe4] sm:$0xf]  ;;  %v880_v37 = vld [vmem:[#allocation2 + $0xe8] sm:$0xf0]  ;;  %v68_v38 = vld [vmem:[%s1364_s0 + $0x10] sm:$0xff]  ;;  %v779_v42 = vor.u32 %v1071_v29, %v776_v30  ;;  %v1305_v43 = vpack.c.bf16 %v67_v33, %v67_v33  ;;  %s751_s10 = sshll.u32 %s1239_s30, 4  ;;  %s752_s10 = int_to_ptr.vmem [resolvable:$true] %s751_s10 }
  0x24   :  { %384 = vmatpush.bf16.msra.mxu1 %v847_v2  ;;  %v1113_v39 = vld [vmem:[#allocation2 + $0x164] sm:$0xf]  ;;  %v944_v40 = vld [vmem:[#allocation2 + $0x168] sm:$0xf0]  ;;  %v883_v46 = vor.u32 %v1097_v36, %v880_v37  ;;  %v1307_v47 = vpack.c.bf16 %v68_v38, %v68_v38  ;;  %v1095_v49 = vld [vmem:[#allocation2 + $0xd4] sm:$0xf] }
  0x25   :  { %397 = vmatpush.bf16.msra.mxu2 %v911_v3  ;;  %409 = vmatpush.bf16.msra.mxu3 %v795_v10  ;;  %v1069_v44 = vld [vmem:[#allocation2 + $0x4] sm:$0xf]  ;;  %v768_v45 = vld [vmem:[#allocation2 + $0x8] sm:$0xf0]  ;;  %v947_v48 = vor.u32 %v1113_v39, %v944_v40  ;;  %v872_v50 = vld [vmem:[#allocation2 + $0xd8] sm:$0xf0] }
  0x26   :  { %v1124_v51 = vld [vmem:[#allocation5 + $0x38] sm:$0xff]  ;;  %v1111_v52 = vld [vmem:[#allocation2 + $0x154] sm:$0xf]  ;;  %v771_v54 = vor.u32 %v1069_v44, %v768_v45  ;;  %v875_v56 = vor.u32 %v1095_v49, %v872_v50  ;;  %v1093_v58 = vld [vmem:[#allocation2 + $0xc4] sm:$0xf]  ;;  %s753_s12 = sshll.u32 %s1373_s9, 4  ;;  %s754_s12 = int_to_ptr.hbm [resolvable:$true] %s753_s12 }
  0x27   :  { %372 = vmatpush.bf16.msra.mxu0 %v775_v11  ;;  %v936_v53 = vld [vmem:[#allocation2 + $0x158] sm:$0xf0]  ;;  %v1123_v55 = vld [vmem:[#allocation5 + $0x30] sm:$0xff]  ;;  %v864_v59 = vld [vmem:[#allocation2 + $0xc8] sm:$0xf0] }
  0x28   :  { %385 = vmatpush.bf16.msra.mxu1 %v839_v15  ;;  %v939_v57 = vor.u32 %v1111_v52, %v936_v53  ;;  %v1109_v60 = vld [vmem:[#allocation2 + $0x144] sm:$0xf]  ;;  %v928_v61 = vld [vmem:[#allocation2 + $0x148] sm:$0xf0]  ;;  %v867_v63 = vor.u32 %v1093_v58, %v864_v59  ;;  %v1091_v1 = vld [vmem:[#allocation2 + $0xb4] sm:$0xf] }
  0x29   :  { %398 = vmatpush.bf16.msra.mxu2 %v903_v16  ;;  %410 = vmatpush.bf16.msra.mxu3 %v787_v26  ;;  %v1122_v62 = vld [vmem:[#allocation5 + $0x28] sm:$0xff]  ;;  %v931_v0 = vor.u32 %v1109_v60, %v928_v61  ;;  %v856_v2 = vld [vmem:[#allocation2 + $0xb8] sm:$0xf0]  ;;  %v1107_v3 = vld [vmem:[#allocation2 + $0x134] sm:$0xf] }
  0x2a   :  { %v920_v4 = vld [vmem:[#allocation2 + $0x138] sm:$0xf0]  ;;  %v1121_v5 = vld [vmem:[#allocation5 + $0x20] sm:$0xff]  ;;  %v859_v6 = vor.u32 %v1091_v1, %v856_v2  ;;  %v848_v9 = vld [vmem:[#allocation2 + $0xa8] sm:$0xf0] }
  0x2b   :  { %373 = vmatpush.bf16.msra.mxu0 %v767_v27  ;;  %v923_v7 = vor.u32 %v1107_v3, %v920_v4  ;;  %v1089_v8 = vld [vmem:[#allocation2 + $0xa4] sm:$0xf]  ;;  %v912_v11 = vld [vmem:[#allocation2 + $0x128] sm:$0xf0]  ;;  %v1120_v12 = vld [vmem:[#allocation5 + $0x18] sm:$0xff] }
  0x2c   :  { %386 = vmatpush.bf16.msra.mxu1 %v831_v31  ;;  %v1105_v10 = vld [vmem:[#allocation2 + $0x124] sm:$0xf]  ;;  %v851_v13 = vor.u32 %v1089_v8, %v848_v9  ;;  %v1087_v15 = vld [vmem:[#allocation2 + $0x94] sm:$0xf]  ;;  %v840_v16 = vld [vmem:[#allocation2 + $0x98] sm:$0xf0] }
  0x2d   :  { %399 = vmatpush.bf16.msra.mxu2 %v895_v35  ;;  %411 = vmatpush.bf16.msra.mxu3 %v779_v42  ;;  %v915_v14 = vor.u32 %v1105_v10, %v912_v11  ;;  %v1103_v17 = vld [vmem:[#allocation2 + $0x114] sm:$0xf]  ;;  %v904_v18 = vld [vmem:[#allocation2 + $0x118] sm:$0xf0]  ;;  %v843_v19 = vor.u32 %v1087_v15, %v840_v16  ;;  %v1085_v21 = vld [vmem:[#allocation2 + $0x84] sm:$0xf] }
  0x2e   :  { %374 = vmatmul.bf16.vlgmr.msra.gmra.mxu0 %v69_v41  ;;  %v907_v20 = vor.u32 %v1103_v17, %v904_v18  ;;  %v832_v22 = vld [vmem:[#allocation2 + $0x88] sm:$0xf0]  ;;  %v1101_v23 = vld [vmem:[#allocation2 + $0x104] sm:$0xf]  ;;  %v1119_v27 = vld [vmem:[#allocation5 + $0x10] sm:$0xff] }
  0x2f   :  { %418 = vmatpush.bf16.msrb.mxu0 %v891_v32  ;;  %387 = vmatmul.bf16.vlgmr.msra.gmra.mxu1 %v1305_v43  ;;  %v896_v24 = vld [vmem:[#allocation2 + $0x108] sm:$0xf0]  ;;  %v835_v25 = vor.u32 %v1085_v21, %v832_v22  ;;  %v1132_v28 = vld [vmem:[#allocation5 + $0x78] sm:$0xff]  ;;  %v1131_v30 = vld [vmem:[#allocation5 + $0x70] sm:$0xff] }
  0x30   :  { %431 = vmatpush.bf16.msrb.mxu1 %v955_v34  ;;  %400 = vmatmul.bf16.vlgmr.msra.gmra.mxu2 %v1307_v47  ;;  %v899_v26 = vor.u32 %v1101_v23, %v896_v24  ;;  %v1118_v29 = vld [vmem:[#allocation5 + $0x8] sm:$0xff]  ;;  %v1117_v31 = vld [vmem:[#allocation5] sm:$0xff]  ;;  %v1128_v34 = vld [vmem:[#allocation5 + $0x58] sm:$0xff] }
  0x31   :  { %580 = vmatpush.bf16.msrb.mxu2 %v1124_v51  ;;  %412 = vmatpush.bf16.msra.mxu3 %v771_v54  ;;  %v1130_v32 = vld [vmem:[#allocation5 + $0x68] sm:$0xff]  ;;  %v1129_v33 = vld [vmem:[#allocation5 + $0x60] sm:$0xff]  ;;  %v1127_v35 = vld [vmem:[#allocation5 + $0x50] sm:$0xff] }
  0x32   :  { %v120_v36 = vld [vmem:[%s1366_s2] sm:$0x3]  ;;  %v1126_v38 = vld [vmem:[#allocation5 + $0x48] sm:$0xff]  ;;  %v1140_v44 = vld [vmem:[%s1369_s5 + $0x38] sm:$0xff] }
  0x33   :  { %419 = vmatpush.bf16.msrb.mxu0 %v883_v46  ;;  %v122_v37 = vperm.slane %v120_v36, 0  ;;  %v1125_v42 = vld [vmem:[#allocation5 + $0x40] sm:$0xff]  ;;  %v123_v54 = vperm.slane %v120_v36, 1  ;;  %v1138_v1 = vld [vmem:[%s1369_s5 + $0x28] sm:$0xff]  ;;  %v1136_v3 = vld [vmem:[%s1369_s5 + $0x18] sm:$0xff] }
  0x34   :  { %432 = vmatpush.bf16.msrb.mxu1 %v947_v48  ;;  %413 = vmatmul.bf16.vlgmr.msra.gmra.mxu3 %v69_v41  ;;  %v1137_v2 = vld [vmem:[%s1369_s5 + $0x20] sm:$0xff]  ;;  %v1135_v4 = vld [vmem:[%s1369_s5 + $0x10] sm:$0xff]  ;;  %v1142_v10 = vld [vmem:[%s1371_s7 + $0x8] sm:$0xff] }
  0x35   :  { %581 = vmatpush.bf16.msrb.mxu2 %v1123_v55  ;;  %593 = vmatpush.bf16.msrb.mxu3 %v1132_v28  ;;  %v1143_v9 = vld [vmem:[%s1371_s7 + $0x10] sm:$0xff] }
  0x37   :  { %420 = vmatpush.bf16.msrb.mxu0 %v875_v56 }
  0x38   :  { %433 = vmatpush.bf16.msrb.mxu1 %v939_v57 }
  0x39   :  { %582 = vmatpush.bf16.msrb.mxu2 %v1122_v62  ;;  %594 = vmatpush.bf16.msrb.mxu3 %v1131_v30 }
  0x3b   :  { %421 = vmatpush.bf16.msrb.mxu0 %v867_v63 }
  0x3c   :  { %434 = vmatpush.bf16.msrb.mxu1 %v931_v0  ;;  %v1139_v0 = vld [vmem:[%s1369_s5 + $0x30] sm:$0xff] }
  0x3d   :  { %583 = vmatpush.bf16.msrb.mxu2 %v1121_v5  ;;  %595 = vmatpush.bf16.msrb.mxu3 %v1130_v32  ;;  %v1134_v5 = vld [vmem:[%s1369_s5 + $0x8] sm:$0xff] }
  0x3f   :  { %422 = vmatpush.bf16.msrb.mxu0 %v859_v6  ;;  %v1133_v6 = vld [vmem:[%s1369_s5] sm:$0xff] }
  0x40   :  { %435 = vmatpush.bf16.msrb.mxu1 %v923_v7  ;;  %v1144_v7 = vld [vmem:[%s1371_s7 + $0x18] sm:$0xff] }
  0x41   :  { %584 = vmatpush.bf16.msrb.mxu2 %v1120_v12  ;;  %596 = vmatpush.bf16.msrb.mxu3 %v1129_v33  ;;  %v1152_v12 = vld [vmem:[%s1368_s4] ss:$0 sm:$0xff] }
  0x43   :  { %423 = vmatpush.bf16.msrb.mxu0 %v851_v13 }
  0x44   :  { %436 = vmatpush.bf16.msrb.mxu1 %v915_v14 }
  0x45   :  { %585 = vmatpush.bf16.msrb.mxu2 %v1119_v27  ;;  %597 = vmatpush.bf16.msrb.mxu3 %v1128_v34 }
  0x47   :  { %424 = vmatpush.bf16.msrb.mxu0 %v843_v19  ;;  %v1141_v19 = vld [vmem:[%s1371_s7] sm:$0xff] }
  0x48   :  { %437 = vmatpush.bf16.msrb.mxu1 %v907_v20  ;;  %v1153_v20 = vld [vmem:[%s1370_s6] ss:$0 sm:$0xff] }
  0x49   :  { %586 = vmatpush.bf16.msrb.mxu2 %v1118_v29  ;;  %598 = vmatpush.bf16.msrb.mxu3 %v1127_v35 }
  0x4b   :  { %425 = vmatpush.bf16.msrb.mxu0 %v835_v25 }
  0x4c   :  { %438 = vmatpush.bf16.msrb.mxu1 %v899_v26  ;;  %v1154_v26 = vld [vmem:[%s1372_s8] ss:$0 sm:$0xff] }
  0x4d   :  { %587 = vmatpush.bf16.msrb.mxu2 %v1117_v31  ;;  %599 = vmatpush.bf16.msrb.mxu3 %v1126_v38 }
  0x4e   :  { %426 = vmatmul.bf16.vlgmr.msrb.gmra.mxu0 %v1305_v43 }
  0x4f   :  { %439 = vmatmul.bf16.vlgmr.msrb.gmra.mxu1 %v1307_v47  ;;  %676 = vmatpush.bf16.msra.mxu0 %v1140_v44 }
  0x50   :  { %735 = vmatpush.bf16.msra.mxu1 %v1144_v7 }
  0x51   :  { %600 = vmatpush.bf16.msrb.mxu3 %v1125_v42 }
  0x53   :  { %677 = vmatpush.bf16.msra.mxu0 %v1139_v0 }
  0x54   :  { %736 = vmatpush.bf16.msra.mxu1 %v1143_v9 }
  0x57   :  { %678 = vmatpush.bf16.msra.mxu0 %v1138_v1 }
  0x58   :  { %737 = vmatpush.bf16.msra.mxu1 %v1142_v10 }
  0x5b   :  { %679 = vmatpush.bf16.msra.mxu0 %v1137_v2 }
  0x5c   :  { %738 = vmatpush.bf16.msra.mxu1 %v1141_v19 }
  0x5f   :  { %680 = vmatpush.bf16.msra.mxu0 %v1136_v3 }
  0x63   :  { %681 = vmatpush.bf16.msra.mxu0 %v1135_v4 }
  0x67   :  { %682 = vmatpush.bf16.msra.mxu0 %v1134_v5 }
  0x6b   :  { %683 = vmatpush.bf16.msra.mxu0 %v1133_v6 }
  0xab   :  { %v375_v39 = vpop.f32.mrf.mxu0 }
  0xac   :  { %v376_v40 = vadd.f32 %v375_v39, %v122_v37  ;;  %v388_v41 = vpop.f32.mrf.mxu1 }
  0xae   :  { %v389_v43 = vadd.f32 %v388_v41, %v376_v40 }
  0xb3   :  { %v401_v45 = vpop.f32.mrf.mxu2  ;;  %v377_v46 = vpop.f32.mrf.mxu0 }
  0xb4   :  { %v402_v47 = vadd.f32 %v401_v45, %v389_v43  ;;  %v390_v48 = vpop.f32.mrf.mxu1 }
  0xb6   :  { %v444_v49 = vmax.f32 %v402_v47, 0.0 }
  0xb7   :  { %v414_v51 = vpop.f32.mrf.mxu3 }
  0xb8   :  { %v446_v50 = vpack.c.bf16 %v444_v49, %v444_v49  ;;  %v415_v55 = vadd.f32 %v414_v51, %v123_v54 }
  0xba   :  { %588 = vmatmul.bf16.vlgmr.msrb.gmra.mxu2 %v446_v50 }
  0xbb   :  { %v403_v52 = vpop.f32.mrf.mxu2 }
  0xbf   :  { %v416_v53 = vpop.f32.mrf.mxu3 }
  0xcb   :  { %v427_v56 = vpop.f32.mrf.mxu0 }
  0xcc   :  { %v428_v57 = vadd.f32 %v427_v56, %v415_v55  ;;  %v440_v58 = vpop.f32.mrf.mxu1 }
  0xce   :  { %v441_v59 = vadd.f32 %v440_v58, %v428_v57 }
  0xd0   :  { %v445_v60 = vmax.f32 %v441_v59, 0.0 }
  0xd2   :  { %v447_v61 = vpack.c.bf16 %v445_v60, %v445_v60 }
  0xd3   :  { %v429_v62 = vpop.f32.mrf.mxu0 }
  0xd4   :  { %v442_v63 = vpop.f32.mrf.mxu1  ;;  %601 = vmatmul.bf16.vlgmr.msrb.gmra.mxu3 %v447_v61 }
 0x13d   :  { %v589_v8 = vpop.f32.mrf.mxu2 }
 0x13e   :  { %v590_v13 = vadd.f32 %v1152_v12, %v589_v8 }
 0x145   :  { %v591_v11 = vpop.f32.mrf.mxu2 }
 0x157   :  { %v602_v14 = vpop.f32.mrf.mxu3 }
 0x158   :  { %v603_v15 = vadd.f32 %v602_v14, %v590_v13 }
 0x15a   :  { %v606_v16 = vmax.f32 %v603_v15, 0.0 }
 0x15c   :  { %v607_v17 = vpack.c.bf16 %v606_v16, %v606_v16 }
 0x15e   :  { %684 = vmatmul.bf16.vlgmr.msra.gmra.mxu0 %v607_v17 }
 0x15f   :  { %v604_v18 = vpop.f32.mrf.mxu3 }
 0x1db   :  { %v685_v21 = vpop.f32.mrf.mxu0 }
 0x1dc   :  { %v686_v22 = vadd.f32 %v1153_v20, %v685_v21 }
 0x1de   :  { %v689_v23 = vmax.f32 %v686_v22, 0.0 }
 0x1e0   :  { %v690_v24 = vpack.c.bf16 %v689_v23, %v689_v23 }
 0x1e2   :  { %1068 = vmatmul.msk.bf16.vlgmr.msra.gmra.mxu1 %vm727_vm0, %v690_v24 }
 0x1e3   :  { %v687_v25 = vpop.f32.mrf.mxu0 }
 0x25f   :  { %v740_v27 = vpop.f32.mrf.mxu1 }
 0x260   :  { %v741_v28 = vadd.f32 %v1154_v26, %v740_v27 }
 0x262   :  { %v744_v29 = vpack.c.bf16 %v741_v28, %v741_v28 }
 0x264   :  { %745 = vst [vmem:[#allocation7] sm:$0xf] %v744_v29 }
 0x265   :  { %756 = dma.vmem_to_hbm [thread:$0]  %s752_s10, 64, %s754_s12, [#allocation4]  }
 0x267   :  { %v742_v30 = vpop.f32.mrf.mxu1 }
 0x268   :  { %1231 = dma.done.wait [#allocation4], 64  }
 0x269   :  { %1232 = vsyncadd [#allocation4], 4294967232 }
 0x26a   :  { %761 = vsyncpa [#allocation3], 1 }
 0x26b   :  { %762 = vsyncpa [#allocation6], 1 }
 0x26c   :  { %763 = vsyncpa [#allocation4], 1 }

</bundles_post_ra>
